<compile_context>
chip_gen: v7x
topology: tpu7x:2x2x1
jax: 0.10.0
libtpu: 0.0.40
codegen_flags: <defaults>
</compile_context>

<pallas_src>
import jax
import jax.numpy as jnp
from jax.experimental import pallas as pl
from jax.experimental.pallas import tpu as pltpu

LANE = 128


def _round_up(n, m):
    return ((n + m - 1) // m) * m


def linear_kernel(x_ref, w_ref, b_ref, o_ref):
    # One MXU matmul (bf16 inputs, f32 accumulate) + f32 bias add on the VPU.
    acc = jnp.dot(x_ref[...], w_ref[...], preferred_element_type=jnp.float32)
    o_ref[...] = (acc + b_ref[...]).astype(o_ref.dtype)


def fold_params(params, compute_dtype=jnp.bfloat16):
    """Fold the 3 activation-free Linear layers into one affine map and pad it
    lane-dense (out_dim -> multiple of 128).  Call ONCE per parameter set; this
    is hoisted out of the per-call forward path."""
    hp = jax.lax.Precision.HIGHEST
    w1, b1 = params["w1"], params["b1"]   # (in, h1), (1, h1)
    w2, b2 = params["w2"], params["b2"]   # (h1, h2), (1, h2)
    w3, b3 = params["w3"], params["b3"]   # (h2, out), (1, out)

    w = jnp.dot(jnp.dot(w1, w2, precision=hp), w3, precision=hp)              # (in, out)
    b = jnp.dot(jnp.dot(b1, w2, precision=hp) + b2, w3, precision=hp) + b3    # (1, out)

    out_dim = w.shape[1]
    n_pad = _round_up(out_dim, LANE)
    w_p = jnp.zeros((w.shape[0], n_pad), compute_dtype).at[:, :out_dim].set(
        w.astype(compute_dtype))
    # Bias stays f32: it is added after the f32 accumulation inside the kernel.
    b_p = jnp.zeros((1, n_pad), jnp.float32).at[:, :out_dim].set(
        b.astype(jnp.float32))
    return w_p, b_p, out_dim


def simple_net_forward(x, w_p, b_p, out_dim, *, bm=None):
    """x: (B, input_dim).  w_p: (input_dim, n_pad) folded+padded weight,
    b_p: (1, n_pad) folded+padded bias, both from fold_params()."""
    B, K = x.shape
    n_pad = w_p.shape[1]
    compute_dtype = w_p.dtype

    if bm is None:
        # Single grid step for small batches (no per-step overhead / pipeline
        # bubble on single-TC v5e/v6e); 512-row tiles near the HBM roofline for
        # large batches, comfortably inside default scoped VMEM with bf16.
        bm = min(512, _round_up(B, 8))
    bm = max(8, _round_up(bm, 8))

    grid = (pl.cdiv(B, bm),)  # ragged last block is clipped by Pallas; K is never block-padded

    dt_bytes = jnp.dtype(compute_dtype).itemsize
    cost = pl.CostEstimate(
        flops=2 * B * K * n_pad,
        bytes_accessed=(B * K + K * n_pad) * dt_bytes + (B * n_pad + n_pad) * 4,
        transcendentals=0,
    )

    out = pl.pallas_call(
        linear_kernel,
        out_shape=jax.ShapeDtypeStruct((B, n_pad), jnp.float32),
        grid_spec=pl.GridSpec(
            grid=grid,
            in_specs=[
                pl.BlockSpec((bm, K), lambda i: (i, 0)),
                # Constant index maps -> weight/bias stay resident in VMEM across
                # grid steps.  (pipeline_mode=pl.Buffered(1) would drop their
                # second pipeline buffer; only relevant once bm is scaled up
                # against v7x's 64 MiB VMEM, so omitted here.)
                pl.BlockSpec((K, n_pad), lambda i: (0, 0)),
                pl.BlockSpec((1, n_pad), lambda i: (0, 0)),
            ],
            out_specs=pl.BlockSpec((bm, n_pad), lambda i: (i, 0)),
        ),
        compiler_params=pltpu.CompilerParams(
            dimension_semantics=("parallel",),  # lets v7x shard grid steps across its 2 TCs
        ),
        cost_estimate=cost,
    )(x.astype(compute_dtype), w_p, b_p)

    return out[:, :out_dim]


def init_params(key, input_dim, h_1, h_2, output_dim, dtype=jnp.float32):
    """Deterministic init matching nn.Linear's U(-1/sqrt(fan_in), 1/sqrt(fan_in)).
    Weights are stored transposed: (fan_in, fan_out)."""
    def linear(k, fan_in, fan_out):
        kw, kb = jax.random.split(k)
        bound = 1.0 / jnp.sqrt(fan_in)
        w = jax.random.uniform(kw, (fan_in, fan_out), dtype, -bound, bound)
        b = jax.random.uniform(kb, (1, fan_out), dtype, -bound, bound)
        return w, b

    k1, k2, k3 = jax.random.split(key, 3)
    w1, b1 = linear(k1, input_dim, h_1)
    w2, b2 = linear(k2, h_1, h_2)
    w3, b3 = linear(k3, h_2, output_dim)
    return {"w1": w1, "b1": b1, "w2": w2, "b2": b2, "w3": w3, "b3": b3}


def reference_forward(x, p):
    """Unfused f32 reference: matches the PyTorch module op-for-op."""
    hp = jax.lax.Precision.HIGHEST
    h = jnp.dot(x, p["w1"], precision=hp) + p["b1"]
    h = jnp.dot(h, p["w2"], precision=hp) + p["b2"]
    return jnp.dot(h, p["w3"], precision=hp) + p["b3"]


if __name__ == "__main__":
    # MNIST-ish shapes: input_dim=784, h1=64, h2=32, out=10.
    input_dim, h_1, h_2, output_dim = 784, 64, 32, 10

    key = jax.random.PRNGKey(0)
    kx, kp = jax.random.split(key)
    params = init_params(kp, input_dim, h_1, h_2, output_dim)

    # Fold + pad once (hoisted out of the per-call path).
    w_p, b_p, out_dim = fold_params(params, compute_dtype=jnp.bfloat16)
    w_p, b_p = jax.block_until_ready((w_p, b_p))

    # Case 1: B a multiple of 8 -> single exact grid step (bm = B = 256).
    B = 256
    x = jax.random.normal(kx, (B, input_dim), dtype=jnp.float32)
    out = jax.block_until_ready(simple_net_forward(x, w_p, b_p, out_dim))
    ref = reference_forward(x, params)
    assert out.shape == (B, output_dim)
    err = float(jnp.max(jnp.abs(out - ref)))
    assert jnp.allclose(out, ref, atol=2e-2, rtol=2e-2), err  # bf16 inputs, f32 accumulate

    # Case 2: ragged batch, no wrapper pad copy: grid = cdiv(200, 128) = 2,
    # last block clipped by Pallas (only the M dim is ragged).
    B2 = 200
    x2 = jax.random.normal(jax.random.fold_in(kx, 1), (B2, input_dim), jnp.float32)
    out2 = jax.block_until_ready(simple_net_forward(x2, w_p, b_p, out_dim, bm=128))
    ref2 = reference_forward(x2, params)
    assert out2.shape == (B2, output_dim)
    err2 = float(jnp.max(jnp.abs(out2 - ref2)))
    assert jnp.allclose(out2, ref2, atol=2e-2, rtol=2e-2), err2

    print("KERNEL_OK")
</pallas_src>

<mosaic_0001>
module attributes {stable_mosaic.version = 11 : i64} {
  func.func @linear_kernel(%arg0: i32, %arg1: memref<256x784xbf16, #tpu.memory_space<vmem>>, %arg2: memref<784x128xbf16, #tpu.memory_space<vmem>>, %arg3: memref<1x128xf32, #tpu.memory_space<vmem>>, %arg4: memref<256x128xf32, #tpu.memory_space<vmem>>) attributes {dimension_semantics = [#tpu.dimension_semantics<parallel>], iteration_bounds = array<i64: 1>, scalar_prefetch = 0 : i64, scratch_operands = 0 : i64, tpu.core_type = #tpu.core_type<tc>, window_params = [{transform_indices = @transform_0, window_bounds = array<i64: 256, 784>}, {pipeline_mode = #tpu.pipeline_mode<synchronous>, transform_indices = @transform_1, window_bounds = array<i64: 784, 128>}, {pipeline_mode = #tpu.pipeline_mode<synchronous>, transform_indices = @transform_2, window_bounds = array<i64: 1, 128>}, {transform_indices = @transform_3, window_bounds = array<i64: 256, 128>}]} {
    %c0 = arith.constant 0 : index
    %c0_0 = arith.constant 0 : index
    %0 = vector.load %arg1[%c0, %c0_0] : memref<256x784xbf16, #tpu.memory_space<vmem>>, vector<256x784xbf16>
    %c0_1 = arith.constant 0 : index
    %c0_2 = arith.constant 0 : index
    %1 = vector.load %arg2[%c0_1, %c0_2] : memref<784x128xbf16, #tpu.memory_space<vmem>>, vector<784x128xbf16>
    %cst = arith.constant dense<0.000000e+00> : vector<256x128xf32>
    %2 = tpu.matmul %0, %1, %cst {dimension_numbers = #tpu.dot_dimension_numbers<[1], [0], [0], [1], [0, 0, 1, 1], [], []>} : vector<256x784xbf16>, vector<784x128xbf16>, vector<256x128xf32> -> vector<256x128xf32>
    %c0_3 = arith.constant 0 : index
    %c0_4 = arith.constant 0 : index
    %3 = vector.load %arg3[%c0_3, %c0_4] : memref<1x128xf32, #tpu.memory_space<vmem>>, vector<1x128xf32>
    %4 = vector.broadcast %3 : vector<1x128xf32> to vector<256x128xf32>
    %5 = arith.addf %2, %4 : vector<256x128xf32>
    %c0_5 = arith.constant 0 : index
    %c0_6 = arith.constant 0 : index
    %6 = vector.load %arg4[%c0_5, %c0_6] : memref<256x128xf32, #tpu.memory_space<vmem>>, vector<256x128xf32>
    tpu.vector_store %arg4[%c0_5, %c0_6], %5 {strides = array<i32>} : memref<256x128xf32, #tpu.memory_space<vmem>>, vector<256x128xf32>,
    return
  }
  func.func @transform_0(%arg0: i32) -> (i32, i32) {
    %c0_i32 = arith.constant 0 : i32
    %c0_i32_0 = arith.constant 0 : i32
    return %arg0, %c0_i32 : i32, i32
  }
  func.func @transform_1(%arg0: i32) -> (i32, i32) {
    %c0_i32 = arith.constant 0 : i32
    %c0_i32_0 = arith.constant 0 : i32
    %c0_i32_1 = arith.constant 0 : i32
    return %c0_i32, %c0_i32_0 : i32, i32
  }
  func.func @transform_2(%arg0: i32) -> (i32, i32) {
    %c0_i32 = arith.constant 0 : i32
    %c0_i32_0 = arith.constant 0 : i32
    %c0_i32_1 = arith.constant 0 : i32
    return %c0_i32, %c0_i32_0 : i32, i32
  }
  func.func @transform_3(%arg0: i32) -> (i32, i32) {
    %c0_i32 = arith.constant 0 : i32
    %c0_i32_0 = arith.constant 0 : i32
    return %arg0, %c0_i32 : i32, i32
  }
}

</mosaic_0001>

<bundles_post_ra>
// kernel: tpu_custom_call.1
= control target key start
LH: loop header
LB: loop body
LE: loop exit
PB: predicated region body
PF: predicated region fallthrough
CT: control target
= control target key end

     0   :  { %s3436_s0 = inlined_call_operand.vmem [shape: bf16[256,784], index: 0, kind: input, shape index: {}]   ;;  %s3437_s1 = inlined_call_operand.vmem [shape: bf16[784,128], index: 1, kind: input, shape index: {}]   ;;  %s3438_s2 = inlined_call_operand.vmem [shape: f32[1,128], index: 2, kind: input, shape index: {}]   ;;  %s3439_s3 = inlined_call_operand.hbm [shape: f32[256,128], index: 3, kind: output, shape index: {}]  }
   0x1   :  { %v2428_v0 = vld [vmem:[%s3437_s1 + $0x40] sm:$0xff]   ;;  %v2430_v2 = vld [vmem:[%s3437_s1 + $0x48] sm:$0xff]   ;;  %v2432_v4 = vld [vmem:[%s3437_s1 + $0x50] sm:$0xff]  }
   0x2   :  { %v2429_v1 = vld [vmem:[%s3437_s1] sm:$0xff]   ;;  %2022 = vmatprep.subr.bf16.mxu0 %v2428_v0  ;;  %2409 = vmatprep.subr.bf16.mxu1 %v2428_v0  ;;  %v2431_v3 = vld [vmem:[%s3437_s1 + $0x8] sm:$0xff]   ;;  %v2433_v5 = vld [vmem:[%s3437_s1 + $0x10] sm:$0xff]  }
   0x3   :  { %2023 = vmatpush3.bf16.msra.mxu0 %v2429_v1  ;;  %2417 = vmatpush3.bf16.msra.mxu1 %v2429_v1  ;;  %v2434_v6 = vld [vmem:[%s3437_s1 + $0x58] sm:$0xff]   ;;  %v2436_v8 = vld [vmem:[%s3437_s1 + $0x60] sm:$0xff]   ;;  %v2438_v10 = vld [vmem:[%s3437_s1 + $0x68] sm:$0xff]  }
   0x4   :  { %2024 = vmatprep.subr.bf16.mxu0 %v2430_v2  ;;  %2410 = vmatprep.subr.bf16.mxu1 %v2430_v2  ;;  %v2435_v7 = vld [vmem:[%s3437_s1 + $0x18] sm:$0xff]   ;;  %v2437_v9 = vld [vmem:[%s3437_s1 + $0x20] sm:$0xff]   ;;  %v2439_v13 = vld [vmem:[%s3437_s1 + $0x28] sm:$0xff]  }
   0x5   :  { %v2446_v11 = vld [vmem:[%s3436_s0 + $0x4] ss:$28 sps:$4 sm:$0xff]   ;;  %v2440_v14 = vld [vmem:[%s3437_s1 + $0x70] sm:$0xff]   ;;  %v2442_v16 = vld [vmem:[%s3437_s1 + $0x78] sm:$0xff]  }
   0x6   :  { %v2449_v12 = vld [vmem:[%s3436_s0 + $0x2a4] ss:$28 sps:$4 sm:$0xff]   ;;  %1184 = vmatprep.mubr.bf16.mxu0 %v2446_v11  ;;  %v2441_v15 = vld [vmem:[%s3437_s1 + $0x30] sm:$0xff]   ;;  %v2443_v17 = vld [vmem:[%s3437_s1 + $0x38] sm:$0xff]  }
   0x7   :  { %2025 = vmatpush3.bf16.msra.mxu0 %v2431_v3  ;;  %2418 = vmatpush3.bf16.msra.mxu1 %v2431_v3  ;;  %v2450_v18 = vld [vmem:[%s3437_s1 + $0xc0] sm:$0xff]   ;;  %v2454_v24 = vld [vmem:[%s3437_s1 + $0xc8] sm:$0xff]   ;;  %v2456_v25 = vld [vmem:[%s3436_s0 + $0x3c] ss:$28 sps:$4 sm:$0xff]  }
   0x8   :  { %2026 = vmatprep.subr.bf16.mxu0 %v2432_v4  ;;  %2411 = vmatprep.subr.bf16.mxu1 %v2432_v4  ;;  %v2444_v19 = vld [vmem:[%s3436_s0] ss:$28 sps:$4 sm:$0xff]   ;;  %v2465_v27 = vld [vmem:[%s3437_s1 + $0x148] sm:$0xff]   ;;  %v2460_v30 = vld [vmem:[%s3436_s0 + $0x38] ss:$28 sps:$4 sm:$0xff]  }
   0x9   :  { %1280 = vmatprep.mubr.bf16.mxu1 %v2449_v12  ;;  %v2447_v20 = vld [vmem:[%s3436_s0 + $0x2a0] ss:$28 sps:$4 sm:$0xff]   ;;  %v2455_v28 = vld [vmem:[%s3437_s1 + $0x88] sm:$0xff]   ;;  %v2461_v31 = vld [vmem:[%s3436_s0 + $0x2d8] ss:$28 sps:$4 sm:$0xff]  }
   0xa   :  { %v2451_v21 = vld [vmem:[%s3437_s1 + $0x140] sm:$0xff]   ;;  %v2458_v26 = vld [vmem:[%s3436_s0 + $0x2dc] ss:$28 sps:$4 sm:$0xff]   ;;  %v2467_v29 = vld [vmem:[%s3437_s1 + $0x108] sm:$0xff]  }
   0xb   :  { %2027 = vmatpush3.bf16.msra.mxu0 %v2433_v5  ;;  %2419 = vmatpush3.bf16.msra.mxu1 %v2433_v5  ;;  %v2452_v22 = vld [vmem:[%s3437_s1 + $0x80] sm:$0xff]   ;;  %v2462_v32 = vld [vmem:[%s3437_s1 + $0xd0] sm:$0xff]   ;;  %v2464_v34 = vld [vmem:[%s3437_s1 + $0xd8] sm:$0xff]  }
   0xc   :  { %2028 = vmatprep.subr.bf16.mxu0 %v2434_v6  ;;  %2412 = vmatprep.subr.bf16.mxu1 %v2434_v6  ;;  %v2453_v23 = vld [vmem:[%s3437_s1 + $0x100] sm:$0xff]   ;;  %v2463_v33 = vld [vmem:[%s3437_s1 + $0x90] sm:$0xff]   ;;  %v2466_v37 = vld [vmem:[%s3437_s1 + $0x98] sm:$0xff]  }
   0xd   :  { %v2468_v35 = vld [vmem:[%s3436_s0 + $0x74] ss:$28 sps:$4 sm:$0xff]   ;;  %v2474_v38 = vld [vmem:[%s3437_s1 + $0xe0] sm:$0xff]   ;;  %v2476_v43 = vld [vmem:[%s3437_s1 + $0xe8] sm:$0xff]  }
   0xe   :  { %v2470_v36 = vld [vmem:[%s3436_s0 + $0x314] ss:$28 sps:$4 sm:$0xff]   ;;  %v2475_v42 = vld [vmem:[%s3437_s1 + $0xa0] sm:$0xff]   ;;  %v2478_v45 = vld [vmem:[%s3436_s0 + $0xac] ss:$28 sps:$4 sm:$0xff]  }
   0xf   :  { %2029 = vmatpush3.bf16.msra.mxu0 %v2435_v7  ;;  %2420 = vmatpush3.bf16.msra.mxu1 %v2435_v7  ;;  %v2472_v39 = vld [vmem:[%s3436_s0 + $0x70] ss:$28 sps:$4 sm:$0xff]   ;;  %v2482_v49 = vld [vmem:[%s3436_s0 + $0xa8] ss:$28 sps:$4 sm:$0xff]   ;;  %v2496_v51 = vld [vmem:[%s3437_s1 + $0x158] sm:$0xff]  }
  0x10   :  { %2030 = vmatprep.subr.bf16.mxu0 %v2436_v8  ;;  %2413 = vmatprep.subr.bf16.mxu1 %v2436_v8  ;;  %v2473_v40 = vld [vmem:[%s3436_s0 + $0x310] ss:$28 sps:$4 sm:$0xff]   ;;  %v2483_v50 = vld [vmem:[%s3436_s0 + $0x348] ss:$28 sps:$4 sm:$0xff]   ;;  %v2498_v53 = vld [vmem:[%s3437_s1 + $0x118] sm:$0xff]  }
  0x11   :  { %v2485_v41 = vld [vmem:[%s3437_s1 + $0x150] sm:$0xff]   ;;  %v2480_v46 = vld [vmem:[%s3436_s0 + $0x34c] ss:$28 sps:$4 sm:$0xff]   ;;  %v2490_v54 = vld [vmem:[%s3436_s0 + $0xe4] ss:$28 sps:$4 sm:$0xff]  }
  0x12   :  { %v2487_v44 = vld [vmem:[%s3437_s1 + $0x110] sm:$0xff]   ;;  %v2477_v47 = vld [vmem:[%s3437_s1 + $0xa8] sm:$0xff]   ;;  %v2488_v55 = vld [vmem:[%s3437_s1 + $0xf8] sm:$0xff]  }
  0x13   :  { %2031 = vmatpush3.bf16.msra.mxu0 %v2437_v9  ;;  %2421 = vmatpush3.bf16.msra.mxu1 %v2437_v9  ;;  %v2484_v48 = vld [vmem:[%s3437_s1 + $0xf0] sm:$0xff]   ;;  %v2494_v56 = vld [vmem:[%s3436_s0 + $0xc] ss:$28 sps:$4 sm:$0xff]   ;;  %v2489_v57 = vld [vmem:[%s3437_s1 + $0xb8] sm:$0xff]  }
  0x14   :  { %2032 = vmatprep.subr.bf16.mxu0 %v2438_v10  ;;  %2414 = vmatprep.subr.bf16.mxu1 %v2438_v10  ;;  %v2486_v52 = vld [vmem:[%s3437_s1 + $0xb0] sm:$0xff]   ;;  %v2497_v58 = vld [vmem:[%s3437_s1 + $0x180] sm:$0xff]   ;;  %v2499_v63 = vld [vmem:[%s3436_s0 + $0x11c] ss:$28 sps:$4 sm:$0xff]  }
  0x15   :  { %v2492_v59 = vld [vmem:[%s3436_s0 + $0x8] ss:$28 sps:$4 sm:$0xff]   ;;  %v2495_v62 = vld [vmem:[%s3436_s0 + $0xe0] ss:$28 sps:$4 sm:$0xff]   ;;  %v2503_v3 = vld [vmem:[%s3436_s0 + $0x118] ss:$28 sps:$4 sm:$0xff]  }
  0x16   :  { %v2511_v60 = vld [vmem:[%s3437_s1 + $0x160] sm:$0xff]   ;;  %v2519_v1 = vld [vmem:[%s3437_s1 + $0x168] sm:$0xff]   ;;  %v2505_v5 = vld [vmem:[%s3436_s0 + $0x154] ss:$28 sps:$4 sm:$0xff]  }
  0x17   :  { %2033 = vmatpush3.bf16.msra.mxu0 %v2439_v13  ;;  %2422 = vmatpush3.bf16.msra.mxu1 %v2439_v13  ;;  %v2512_v61 = vld [vmem:[%s3437_s1 + $0x120] sm:$0xff]   ;;  %v2520_v2 = vld [vmem:[%s3437_s1 + $0x128] sm:$0xff]   ;;  %v2507_v6 = vld [vmem:[%s3436_s0 + $0x7c] ss:$28 sps:$4 sm:$0xff]  }
  0x18   :  { %2034 = vmatprep.subr.bf16.mxu0 %v2440_v14  ;;  %2415 = vmatprep.subr.bf16.mxu1 %v2440_v14  ;;  %v2501_v0 = vld [vmem:[%s3436_s0 + $0x44] ss:$28 sps:$4 sm:$0xff]   ;;  %v2533_v7 = vld [vmem:[%s3437_s1 + $0x170] sm:$0xff]   ;;  %v2513_v11 = vld [vmem:[%s3436_s0 + $0x18c] ss:$28 sps:$4 sm:$0xff]  }
  0x19   :  { %v2504_v4 = vld [vmem:[%s3436_s0 + $0x40] ss:$28 sps:$4 sm:$0xff]   ;;  %v2534_v8 = vld [vmem:[%s3437_s1 + $0x130] sm:$0xff]  }
  0x1a   :  { %v2509_v9 = vld [vmem:[%s3436_s0 + $0x150] ss:$28 sps:$4 sm:$0xff]   ;;  %v2510_v10 = vld [vmem:[%s3436_s0 + $0x78] ss:$28 sps:$4 sm:$0xff]  }
  0x1b   :  { %2035 = vmatpush3.bf16.msra.mxu0 %v2441_v15  ;;  %2423 = vmatpush3.bf16.msra.mxu1 %v2441_v15  ;;  %v2541_v12 = vld [vmem:[%s3437_s1 + $0x178] sm:$0xff]   ;;  %v2515_v14 = vld [vmem:[%s3436_s0 + $0xb4] ss:$28 sps:$4 sm:$0xff]   ;;  %v2517_v15 = vld [vmem:[%s3436_s0 + $0x188] ss:$28 sps:$4 sm:$0xff]  }
  0x1c   :  { %2036 = vmatprep.subr.bf16.mxu0 %v2442_v16  ;;  %2416 = vmatprep.subr.bf16.mxu1 %v2442_v16  ;;  %v2542_v13 = vld [vmem:[%s3437_s1 + $0x138] sm:$0xff]   ;;  %v2518_v16 = vld [vmem:[%s3436_s0 + $0xb0] ss:$28 sps:$4 sm:$0xff]  }
  0x1f   :  { %2037 = vmatpush3.bf16.msra.mxu0 %v2443_v17  ;;  %2424 = vmatpush3.bf16.msra.mxu1 %v2443_v17  ;;  %v2521_v17 = vld [vmem:[%s3436_s0 + $0x1c4] ss:$28 sps:$4 sm:$0xff]  }
  0x20   :  { %2134 = vmatprep.subr.bf16.mxu1 %v2450_v18  ;;  %2246 = vmatprep.subr.bf16.mxu0 %v2451_v21  ;;  %v2523_v18 = vld [vmem:[%s3436_s0 + $0xec] ss:$28 sps:$4 sm:$0xff]   ;;  %v2527_v21 = vld [vmem:[%s3436_s0 + $0x1fc] ss:$28 sps:$4 sm:$0xff]  }
  0x22   :  { %1185 = vmatmul.mubr.bf16.vlgmr.msra.gmra.mrb[0].mxu0 %v2444_v19  ;;  %1281 = vmatmul.mubr.bf16.vlgmr.msra.gmra.mrb[0].mxu1 %v2447_v20  ;;  %v2525_v19 = vld [vmem:[%s3436_s0 + $0x1c0] ss:$28 sps:$4 sm:$0xff]   ;;  %v2526_v20 = vld [vmem:[%s3436_s0 + $0xe8] ss:$28 sps:$4 sm:$0xff]  }
  0x23   :  { %2135 = vmatpush3.bf16.msra.mxu1 %v2452_v22  ;;  %2247 = vmatpush3.bf16.msra.mxu0 %v2453_v23  ;;  %v2529_v22 = vld [vmem:[%s3436_s0 + $0x124] ss:$28 sps:$4 sm:$0xff]   ;;  %v2531_v23 = vld [vmem:[%s3436_s0 + $0x1f8] ss:$28 sps:$4 sm:$0xff]  }
  0x24   :  { %2136 = vmatprep.subr.bf16.mxu1 %v2454_v24  ;;  %1192 = vmatprep.mubr.bf16.mxu0 %v2456_v25  ;;  %v2532_v24 = vld [vmem:[%s3436_s0 + $0x120] ss:$28 sps:$4 sm:$0xff]   ;;  %v2535_v25 = vld [vmem:[%s3436_s0 + $0x234] ss:$28 sps:$4 sm:$0xff]  }
  0x25   :  { %1288 = vmatprep.mubr.bf16.mxu1 %v2458_v26  ;;  %2248 = vmatprep.subr.bf16.mxu0 %v2465_v27  ;;  %v2537_v26 = vld [vmem:[%s3436_s0 + $0x15c] ss:$28 sps:$4 sm:$0xff]   ;;  %v2539_v27 = vld [vmem:[%s3436_s0 + $0x230] ss:$28 sps:$4 sm:$0xff]  }
  0x27   :  { %2137 = vmatpush3.bf16.msra.mxu1 %v2455_v28  ;;  %2249 = vmatpush3.bf16.msra.mxu0 %v2467_v29  ;;  %v2540_v28 = vld [vmem:[%s3436_s0 + $0x158] ss:$28 sps:$4 sm:$0xff]   ;;  %v2543_v29 = vld [vmem:[%s3436_s0 + $0x26c] ss:$28 sps:$4 sm:$0xff]  }
  0x28   :  { %2138 = vmatprep.subr.bf16.mxu1 %v2462_v32  ;;  %2250 = vmatprep.subr.bf16.mxu0 %v2485_v41  ;;  %v2548_v32 = vld [vmem:[%s3436_s0 + $0x190] ss:$28 sps:$4 sm:$0xff]  }
  0x2a   :  { %1193 = vmatmul.mubr.bf16.gmra.mrb[4].mxu0 %v2460_v30  ;;  %1289 = vmatmul.mubr.bf16.gmra.mrb[4].mxu1 %v2461_v31  ;;  %v2545_v30 = vld [vmem:[%s3436_s0 + $0x194] ss:$28 sps:$4 sm:$0xff]   ;;  %v2547_v31 = vld [vmem:[%s3436_s0 + $0x268] ss:$28 sps:$4 sm:$0xff]  }
  0x2b   :  { %2139 = vmatpush3.bf16.msra.mxu1 %v2463_v33  ;;  %1200 = vmatprep.mubr.bf16.mxu0 %v2468_v35  ;;  %v2549_v33 = vld [vmem:[%s3436_s0 + $0x1cc] ss:$28 sps:$4 sm:$0xff]  }
  0x2c   :  { %2140 = vmatprep.subr.bf16.mxu1 %v2464_v34  ;;  %1296 = vmatprep.mubr.bf16.mxu1 %v2470_v36  ;;  %v2553_v34 = vld [vmem:[%s3436_s0 + $0x14] ss:$28 sps:$4 sm:$0xff]   ;;  %v2554_v36 = vld [vmem:[%s3436_s0 + $0x1c8] ss:$28 sps:$4 sm:$0xff]  }
  0x2d   :  { %2251 = vmatpush3.bf16.msra.mxu0 %v2487_v44  ;;  %v2551_v35 = vld [vmem:[%s3436_s0 + $0x10] ss:$28 sps:$4 sm:$0xff]  }
  0x2e   :  { %2252 = vmatprep.subr.bf16.mxu0 %v2496_v51 }
  0x2f   :  { %2141 = vmatpush3.bf16.msra.mxu1 %v2466_v37  ;;  %v2555_v37 = vld [vmem:[%s3436_s0 + $0x204] ss:$28 sps:$4 sm:$0xff]  }
  0x30   :  { %2142 = vmatprep.subr.bf16.mxu1 %v2474_v38  ;;  %v2557_v38 = vld [vmem:[%s3436_s0 + $0x4c] ss:$28 sps:$4 sm:$0xff]  }
  0x31   :  { %2253 = vmatpush3.bf16.msra.mxu0 %v2498_v53 }
  0x32   :  { %1201 = vmatmul.mubr.bf16.gmra.mrb[8].mxu0 %v2472_v39  ;;  %1297 = vmatmul.mubr.bf16.gmra.mrb[8].mxu1 %v2473_v40 }
  0x33   :  { %2143 = vmatpush3.bf16.msra.mxu1 %v2475_v42  ;;  %1208 = vmatprep.mubr.bf16.mxu0 %v2478_v45 }
  0x34   :  { %2144 = vmatprep.subr.bf16.mxu1 %v2476_v43  ;;  %1304 = vmatprep.mubr.bf16.mxu1 %v2480_v46 }
  0x35   :  { %2254 = vmatprep.subr.bf16.mxu0 %v2511_v60 }
  0x36   :  { %2255 = vmatpush3.bf16.msra.mxu0 %v2512_v61 }
  0x37   :  { %2145 = vmatpush3.bf16.msra.mxu1 %v2477_v47  ;;  %2256 = vmatprep.subr.bf16.mxu0 %v2519_v1 }
  0x38   :  { %2146 = vmatprep.subr.bf16.mxu1 %v2484_v48 }
  0x3a   :  { %1209 = vmatmul.mubr.bf16.gmra.mrb[12].mxu0 %v2482_v49  ;;  %1305 = vmatmul.mubr.bf16.gmra.mrb[12].mxu1 %v2483_v50 }
  0x3b   :  { %2147 = vmatpush3.bf16.msra.mxu1 %v2486_v52  ;;  %1216 = vmatprep.mubr.bf16.mxu0 %v2490_v54 }
  0x3c   :  { %2148 = vmatprep.subr.bf16.mxu1 %v2488_v55  ;;  %1345 = vmatprep.mubr.bf16.mxu1 %v2494_v56 }
  0x3d   :  { %2257 = vmatpush3.bf16.msra.mxu0 %v2520_v2 }
  0x3e   :  { %2258 = vmatprep.subr.bf16.mxu0 %v2533_v7 }
  0x3f   :  { %2149 = vmatpush3.bf16.msra.mxu1 %v2489_v57 }
  0x40   :  { %2375 = vmatprep.subr.bf16.mxu1 %v2497_v58 }
  0x41   :  { %2259 = vmatpush3.bf16.msra.mxu0 %v2534_v8 }
  0x42   :  { %1217 = vmatmul.mubr.bf16.gmra.mrb[16].mxu0 %v2495_v62  ;;  %1346 = vmatmul.mubr.bf16.vlgmr.msra.gmra.mrb[16].mxu1 %v2492_v59 }
  0x43   :  { %2376 = vmatpush3.bf16.msra.mxu1 %v2497_v58  ;;  %1224 = vmatprep.mubr.bf16.mxu0 %v2499_v63 }
  0x44   :  { %1353 = vmatprep.mubr.bf16.mxu1 %v2501_v0  ;;  %2260 = vmatprep.subr.bf16.mxu0 %v2541_v12 }
  0x45   :  { %2261 = vmatpush3.bf16.msra.mxu0 %v2542_v13 }
  0x4a   :  { %1225 = vmatmul.mubr.bf16.gmra.mrb[20].mxu0 %v2503_v3  ;;  %1354 = vmatmul.mubr.bf16.gmra.mrb[20].mxu1 %v2504_v4 }
  0x4b   :  { %1232 = vmatprep.mubr.bf16.mxu0 %v2505_v5  ;;  %1361 = vmatprep.mubr.bf16.mxu1 %v2507_v6 }
  0x52   :  { %1233 = vmatmul.mubr.bf16.gmra.mrb[24].mxu0 %v2509_v9  ;;  %1362 = vmatmul.mubr.bf16.gmra.mrb[24].mxu1 %v2510_v10 }
  0x53   :  { %1240 = vmatprep.mubr.bf16.mxu0 %v2513_v11  ;;  %1369 = vmatprep.mubr.bf16.mxu1 %v2515_v14 }
  0x5a   :  { %1241 = vmatmul.mubr.bf16.gmra.mrb[28].mxu0 %v2517_v15  ;;  %1370 = vmatmul.mubr.bf16.gmra.mrb[28].mxu1 %v2518_v16 }
  0x5b   :  { %1248 = vmatprep.mubr.bf16.mxu0 %v2521_v17  ;;  %1377 = vmatprep.mubr.bf16.mxu1 %v2523_v18 }
  0x62   :  { %1249 = vmatmul.mubr.bf16.gmra.mrb[32].mxu0 %v2525_v19  ;;  %1378 = vmatmul.mubr.bf16.gmra.mrb[32].mxu1 %v2526_v20 }
  0x63   :  { %1256 = vmatprep.mubr.bf16.mxu0 %v2527_v21  ;;  %1385 = vmatprep.mubr.bf16.mxu1 %v2529_v22 }
  0x6a   :  { %1257 = vmatmul.mubr.bf16.gmra.mrb[36].mxu0 %v2531_v23  ;;  %1386 = vmatmul.mubr.bf16.gmra.mrb[36].mxu1 %v2532_v24 }
  0x6b   :  { %1264 = vmatprep.mubr.bf16.mxu0 %v2535_v25  ;;  %1393 = vmatprep.mubr.bf16.mxu1 %v2537_v26 }
  0x72   :  { %1265 = vmatmul.mubr.bf16.gmra.mrb[40].mxu0 %v2539_v27  ;;  %1394 = vmatmul.mubr.bf16.gmra.mrb[40].mxu1 %v2540_v28 }
  0x73   :  { %1272 = vmatprep.mubr.bf16.mxu0 %v2543_v29  ;;  %1401 = vmatprep.mubr.bf16.mxu1 %v2545_v30 }
  0x7a   :  { %1273 = vmatmul.mubr.bf16.gmra.mrb[44].mxu0 %v2547_v31  ;;  %1402 = vmatmul.mubr.bf16.gmra.mrb[44].mxu1 %v2548_v32 }
  0x7b   :  { %1409 = vmatprep.mubr.bf16.mxu1 %v2549_v33  ;;  %1506 = vmatprep.mubr.bf16.mxu0 %v2553_v34 }
  0x7c   :  { %8 = vsyncpa [#allocation3], 0  ;;  %v2559_v39 = vld [vmem:[%s3436_s0 + $0x200] ss:$28 sps:$4 sm:$0xff]   ;;  %v2560_v40 = vld [vmem:[%s3436_s0 + $0x48] ss:$28 sps:$4 sm:$0xff]  }
  0x7d   :  { %v2561_v41 = vld [vmem:[%s3436_s0 + $0x23c] ss:$28 sps:$4 sm:$0xff]   ;;  %v2563_v42 = vld [vmem:[%s3436_s0 + $0x84] ss:$28 sps:$4 sm:$0xff]   ;;  %v2567_v45 = vld [vmem:[%s3436_s0 + $0x274] ss:$28 sps:$4 sm:$0xff]  }
  0x7e   :  { %v2565_v43 = vld [vmem:[%s3436_s0 + $0x238] ss:$28 sps:$4 sm:$0xff]   ;;  %v2566_v44 = vld [vmem:[%s3436_s0 + $0x80] ss:$28 sps:$4 sm:$0xff]   ;;  %v2571_v47 = vld [vmem:[%s3436_s0 + $0x270] ss:$28 sps:$4 sm:$0xff]  }
  0x7f   :  { %v2569_v46 = vld [vmem:[%s3436_s0 + $0xbc] ss:$28 sps:$4 sm:$0xff]   ;;  %v2573_v49 = vld [vmem:[%s3436_s0 + $0x2ac] ss:$28 sps:$4 sm:$0xff]   ;;  %v2575_v50 = vld [vmem:[%s3436_s0 + $0xf4] ss:$28 sps:$4 sm:$0xff]  }
  0x80   :  { %v2572_v48 = vld [vmem:[%s3436_s0 + $0xb8] ss:$28 sps:$4 sm:$0xff]   ;;  %v2577_v51 = vld [vmem:[%s3436_s0 + $0x2a8] ss:$28 sps:$4 sm:$0xff]   ;;  %v2578_v52 = vld [vmem:[%s3436_s0 + $0xf0] ss:$28 sps:$4 sm:$0xff]  }
  0x81   :  { %v2579_v53 = vld [vmem:[%s3436_s0 + $0x2e4] ss:$28 sps:$4 sm:$0xff]   ;;  %v2581_v54 = vld [vmem:[%s3436_s0 + $0x12c] ss:$28 sps:$4 sm:$0xff]   ;;  %v2585_v57 = vld [vmem:[%s3436_s0 + $0x31c] ss:$28 sps:$4 sm:$0xff]  }
  0x82   :  { %1410 = vmatmul.mubr.bf16.gmra.mrb[48].mxu1 %v2554_v36  ;;  %1507 = vmatmul.mubr.bf16.vlgmr.msra.gmra.mrb[48].mxu0 %v2551_v35  ;;  %v2583_v55 = vld [vmem:[%s3436_s0 + $0x2e0] ss:$28 sps:$4 sm:$0xff]   ;;  %v2584_v56 = vld [vmem:[%s3436_s0 + $0x128] ss:$28 sps:$4 sm:$0xff]   ;;  %v2589_v59 = vld [vmem:[%s3436_s0 + $0x318] ss:$28 sps:$4 sm:$0xff]  }
  0x83   :  { %1417 = vmatprep.mubr.bf16.mxu1 %v2555_v37  ;;  %1514 = vmatprep.mubr.bf16.mxu0 %v2557_v38  ;;  %v2587_v58 = vld [vmem:[%s3436_s0 + $0x164] ss:$28 sps:$4 sm:$0xff]   ;;  %v2591_v61 = vld [vmem:[%s3436_s0 + $0x354] ss:$28 sps:$4 sm:$0xff]   ;;  %v2593_v62 = vld [vmem:[%s3436_s0 + $0x19c] ss:$28 sps:$4 sm:$0xff]  }
  0x84   :  { %v2590_v60 = vld [vmem:[%s3436_s0 + $0x160] ss:$28 sps:$4 sm:$0xff]   ;;  %v2595_v63 = vld [vmem:[%s3436_s0 + $0x350] ss:$28 sps:$4 sm:$0xff]   ;;  %v2596_v0 = vld [vmem:[%s3436_s0 + $0x198] ss:$28 sps:$4 sm:$0xff]  }
  0x85   :  { %v2597_v1 = vld [vmem:[%s3436_s0 + $0x1d4] ss:$28 sps:$4 sm:$0xff]   ;;  %vm1103_vm0 = vcmask 130048   ;;  %v2602_v5 = vld [vmem:[%s3436_s0 + $0x20c] ss:$28 sps:$4 sm:$0xff]  }
  0x86   :  { %v2599_v2 = vld [vmem:[%s3436_s0 + $0x18] ss:$28 sps:$4 sm:$0xff]   ;;  %v2600_v3 = vld [vmem:[%s3436_s0 + $0x1d0] ss:$28 sps:$4 sm:$0xff]   ;;  %v2604_v6 = vld [vmem:[%s3436_s0 + $0x88] ss:$28 sps:$4 sm:$0xff]  }
  0x87   :  { %v2601_v4 = vld [vmem:[%s3436_s0 + $0x50] ss:$28 sps:$4 sm:$0xff]   ;;  %v2605_v7 = vld [vmem:[%s3436_s0 + $0x208] ss:$28 sps:$4 sm:$0xff]   ;;  %v2606_v8 = vld [vmem:[%s3436_s0 + $0xc0] ss:$28 sps:$4 sm:$0xff]  }
  0x88   :  { %v2607_v9 = vld [vmem:[%s3436_s0 + $0x244] ss:$28 sps:$4 sm:$0xff]   ;;  %v2609_v10 = vld [vmem:[%s3436_s0 + $0xf8] ss:$28 sps:$4 sm:$0xff]   ;;  %v2611_v12 = vld [vmem:[%s3436_s0 + $0x130] ss:$28 sps:$4 sm:$0xff]  }
  0x89   :  { %v2610_v11 = vld [vmem:[%s3436_s0 + $0x240] ss:$28 sps:$4 sm:$0xff]   ;;  %v2614_v14 = vld [vmem:[%s3436_s0 + $0x168] ss:$28 sps:$4 sm:$0xff]   ;;  %v2615_v15 = vld [vmem:[%s3436_s0 + $0x278] ss:$28 sps:$4 sm:$0xff]  }
  0x8a   :  { %1418 = vmatmul.mubr.bf16.gmra.mrb[52].mxu1 %v2559_v39  ;;  %1515 = vmatmul.mubr.bf16.gmra.mrb[52].mxu0 %v2560_v40  ;;  %v2612_v13 = vld [vmem:[%s3436_s0 + $0x27c] ss:$28 sps:$4 sm:$0xff]   ;;  %v2617_v17 = vld [vmem:[%s3436_s0 + $0x2b4] ss:$28 sps:$4 sm:$0xff]   ;;  %v2622_v21 = vld [vmem:[%s3436_s0 + $0x2ec] ss:$28 sps:$4 sm:$0xff]  }
  0x8b   :  { %1425 = vmatprep.mubr.bf16.mxu1 %v2561_v41  ;;  %1522 = vmatprep.mubr.bf16.mxu0 %v2563_v42  ;;  %v2616_v16 = vld [vmem:[%s3436_s0 + $0x1a0] ss:$28 sps:$4 sm:$0xff]   ;;  %v2619_v18 = vld [vmem:[%s3436_s0 + $0x1d8] ss:$28 sps:$4 sm:$0xff]   ;;  %v2620_v19 = vld [vmem:[%s3436_s0 + $0x2b0] ss:$28 sps:$4 sm:$0xff]  }
  0x8c   :  { %v2621_v20 = vld [vmem:[%s3436_s0 + $0x210] ss:$28 sps:$4 sm:$0xff]   ;;  %v2624_v22 = vld [vmem:[%s3436_s0 + $0x248] ss:$28 sps:$4 sm:$0xff]   ;;  %v2626_v24 = vld [vmem:[%s3436_s0 + $0x280] ss:$28 sps:$4 sm:$0xff]  }
  0x8d   :  { %v2625_v23 = vld [vmem:[%s3436_s0 + $0x2e8] ss:$28 sps:$4 sm:$0xff]   ;;  %v2629_v26 = vld [vmem:[%s3436_s0 + $0x2b8] ss:$28 sps:$4 sm:$0xff]   ;;  %v2630_v27 = vld [vmem:[%s3436_s0 + $0x320] ss:$28 sps:$4 sm:$0xff]  }
  0x8e   :  { %v2627_v25 = vld [vmem:[%s3436_s0 + $0x324] ss:$28 sps:$4 sm:$0xff]   ;;  %v2631_v28 = vld [vmem:[%s3436_s0 + $0x2f0] ss:$28 sps:$4 sm:$0xff]   ;;  %v2632_v29 = vld [vmem:[%s3436_s0 + $0x35c] ss:$28 sps:$4 sm:$0xff]  }
  0x8f   :  { %v2634_v30 = vld [vmem:[%s3436_s0 + $0x328] ss:$28 sps:$4 sm:$0xff]   ;;  %v2635_v35 = vld [vmem:[%s3436_s0 + $0x358] ss:$28 sps:$4 sm:$0xff]   ;;  %v2636_v36 = vld [vmem:[%s3436_s0 + $0x360] ss:$28 sps:$4 sm:$0xff]  }
  0x92   :  { %1426 = vmatmul.mubr.bf16.gmra.mrb[56].mxu1 %v2565_v43  ;;  %1523 = vmatmul.mubr.bf16.gmra.mrb[56].mxu0 %v2566_v44 }
  0x93   :  { %1433 = vmatprep.mubr.bf16.mxu1 %v2567_v45  ;;  %1530 = vmatprep.mubr.bf16.mxu0 %v2569_v46 }
  0x9a   :  { %1434 = vmatmul.mubr.bf16.gmra.mrb[60].mxu1 %v2571_v47  ;;  %1531 = vmatmul.mubr.bf16.gmra.mrb[60].mxu0 %v2572_v48 }
  0x9b   :  { %1441 = vmatprep.mubr.bf16.mxu1 %v2573_v49  ;;  %1538 = vmatprep.mubr.bf16.mxu0 %v2575_v50 }
  0xa2   :  { %1442 = vmatmul.mubr.bf16.gmra.mrb[64].mxu1 %v2577_v51  ;;  %1539 = vmatmul.mubr.bf16.gmra.mrb[64].mxu0 %v2578_v52 }
  0xa3   :  { %1449 = vmatprep.mubr.bf16.mxu1 %v2579_v53  ;;  %1546 = vmatprep.mubr.bf16.mxu0 %v2581_v54 }
  0xaa   :  { %1450 = vmatmul.mubr.bf16.gmra.mrb[68].mxu1 %v2583_v55  ;;  %1547 = vmatmul.mubr.bf16.gmra.mrb[68].mxu0 %v2584_v56 }
  0xab   :  { %1457 = vmatprep.mubr.bf16.mxu1 %v2585_v57  ;;  %1554 = vmatprep.mubr.bf16.mxu0 %v2587_v58 }
  0xb2   :  { %1458 = vmatmul.mubr.bf16.gmra.mrb[72].mxu1 %v2589_v59  ;;  %1555 = vmatmul.mubr.bf16.gmra.mrb[72].mxu0 %v2590_v60 }
  0xb3   :  { %1465 = vmatprep.mubr.bf16.mxu1 %v2591_v61  ;;  %1562 = vmatprep.mubr.bf16.mxu0 %v2593_v62 }
  0xba   :  { %1466 = vmatmul.mubr.bf16.gmra.mrb[76].mxu1 %v2595_v63  ;;  %1563 = vmatmul.mubr.bf16.gmra.mrb[76].mxu0 %v2596_v0 }
  0xbb   :  { %1570 = vmatprep.mubr.bf16.mxu0 %v2597_v1  ;;  %2377 = vmatprep.mubr.msk.bf16.mxu1 %vm1103_vm0, %v2599_v2 }
  0xc2   :  { %1571 = vmatmul.mubr.bf16.gmra.mrb[80].mxu0 %v2600_v3  ;;  %2378 = vmatmul.mubr.msk.bf16.vlgmr.msra.gmra.mrb[80].mxu1 %vm1103_vm0, %v2601_v4 }
  0xc3   :  { %1578 = vmatprep.mubr.bf16.mxu0 %v2602_v5  ;;  %2381 = vmatprep.mubr.msk.bf16.mxu1 %vm1103_vm0, %v2604_v6 }
  0xca   :  { %1579 = vmatmul.mubr.bf16.gmra.mrb[84].mxu0 %v2605_v7  ;;  %2382 = vmatmul.mubr.msk.bf16.gmra.mrb[84].mxu1 %vm1103_vm0, %v2606_v8 }
  0xcb   :  { %1586 = vmatprep.mubr.bf16.mxu0 %v2607_v9  ;;  %2385 = vmatprep.mubr.msk.bf16.mxu1 %vm1103_vm0, %v2609_v10 }
  0xd2   :  { %1587 = vmatmul.mubr.bf16.gmra.mrb[88].mxu0 %v2610_v11  ;;  %2386 = vmatmul.mubr.msk.bf16.gmra.mrb[88].mxu1 %vm1103_vm0, %v2611_v12 }
  0xd3   :  { %1594 = vmatprep.mubr.bf16.mxu0 %v2612_v13  ;;  %2389 = vmatprep.mubr.msk.bf16.mxu1 %vm1103_vm0, %v2614_v14 }
  0xda   :  { %1595 = vmatmul.mubr.bf16.gmra.mrb[92].mxu0 %v2615_v15  ;;  %2390 = vmatmul.mubr.msk.bf16.gmra.mrb[92].mxu1 %vm1103_vm0, %v2616_v16 }
  0xdb   :  { %1602 = vmatprep.mubr.bf16.mxu0 %v2617_v17  ;;  %2393 = vmatprep.mubr.msk.bf16.mxu1 %vm1103_vm0, %v2619_v18  ;;  %v3202_v17 = vld [vmem:[%s3438_s2] ss:$0 sm:$0xff]  ;;  %s2661_s2 = smov [#allocation2]  }
  0xdc   :  { %s1833_s5 = sshll.u32 %s2661_s2, 4  ;;  %s1834_s5 = int_to_ptr.vmem [resolvable:$true] %s1833_s5 }
  0xdd   :  { %s2637_s6 = scalar_lea.vmem %s1834_s5, 4096  ;;  %p2642_p1 = scmp.lt.s32.totalorder %s1834_s5, %s1834_s5 }
  0xde   :  { %p2638_p0 = scmp.ne.s32.totalorder %s1834_s5, %s2637_s6  ;;  %p2643_p2 = scmp.lt.s32.totalorder %s2637_s6, %s2637_s6 }
  0xe0   :  { %p2644_p3 = por %p2643_p2, %p2642_p1 }
  0xe2   :  { %1603 = vmatmul.mubr.bf16.gmra.mrb[96].mxu0 %v2620_v19  ;;  %2394 = vmatmul.mubr.msk.bf16.gmra.mrb[96].mxu1 %vm1103_vm0, %v2621_v20  ;;  %p2645_p4 = pnand %p2644_p3, %p2638_p0 }
  0xe3   :  { %1610 = vmatprep.mubr.bf16.mxu0 %v2622_v21  ;;  %2397 = vmatprep.mubr.msk.bf16.mxu1 %vm1103_vm0, %v2624_v22 }
  0xea   :  { %1611 = vmatmul.mubr.bf16.gmra.mrb[100].mxu0 %v2625_v23  ;;  %2398 = vmatmul.mubr.msk.bf16.gmra.mrb[100].mxu1 %vm1103_vm0, %v2626_v24 }
  0xeb   :  { %1618 = vmatprep.mubr.bf16.mxu0 %v2627_v25  ;;  %2401 = vmatprep.mubr.msk.bf16.mxu1 %vm1103_vm0, %v2629_v26 }
  0xf2   :  { %1619 = vmatmul.mubr.bf16.gmra.mrb[104].mxu0 %v2630_v27  ;;  %2402 = vmatmul.mubr.msk.bf16.gmra.mrb[104].mxu1 %vm1103_vm0, %v2631_v28 }
  0xf3   :  { %1626 = vmatprep.mubr.bf16.mxu0 %v2632_v29  ;;  %2405 = vmatprep.mubr.msk.bf16.mxu1 %vm1103_vm0, %v2634_v30 }
  0xf5   :  { %v2038_v31 = vpop.f32.mrb[0].mxu0  ;;  %v2110_v32 = vpop.f32.mrb[0].mxu1 }
  0xf6   :  { %v2039_v33 = vpop.f32.mrb[1].mxu0  ;;  %v2111_v34 = vpop.f32.mrb[1].mxu1 }
  0xf7   :  { %v2040_v37 = vadd.f32 %v2039_v33, %v2038_v31  ;;  %v2041_v38 = vpop.f32.mrb[2].mxu0  ;;  %v3182_v39 = vadd.f32 %v2111_v34, %v2110_v32  ;;  %v2113_v40 = vpop.f32.mrb[2].mxu1 }
  0xf8   :  { %v2042_v41 = vpop.f32.mrb[3].mxu0  ;;  %v2114_v42 = vpop.f32.mrb[3].mxu1 }
  0xf9   :  { %v2043_v43 = vadd.f32 %v2042_v41, %v2041_v38  ;;  %v3184_v44 = vadd.f32 %v2114_v42, %v2113_v40  ;;  %v1187_v22 = vadd.f32 %v2040_v37, %v3202_v17 }
  0xfa   :  { %1627 = vmatmul.mubr.bf16.gmra.mrb[108].mxu0 %v2635_v35  ;;  %2406 = vmatmul.mubr.msk.bf16.gmra.mrb[108].mxu1 %vm1103_vm0, %v2636_v36 }
  0xfb   :  { %v1190_v29 = vadd.f32 %v2043_v43, %v3202_v17 }
  0xfd   :  { %v2044_v45 = vpop.f32.mrb[4].mxu0  ;;  %v2116_v46 = vpop.f32.mrb[4].mxu1 }
  0xfe   :  { %v2045_v47 = vpop.f32.mrb[5].mxu0  ;;  %v2117_v48 = vpop.f32.mrb[5].mxu1 }
  0xff   :  { %v2046_v49 = vadd.f32 %v2045_v47, %v2044_v45  ;;  %v2047_v50 = vpop.f32.mrb[6].mxu0  ;;  %v3187_v51 = vadd.f32 %v2117_v48, %v2116_v46  ;;  %v2119_v52 = vpop.f32.mrb[6].mxu1 }
 0x100   :  { %v2048_v53 = vpop.f32.mrb[7].mxu0  ;;  %v2120_v54 = vpop.f32.mrb[7].mxu1 }
 0x101   :  { %v2049_v55 = vadd.f32 %v2048_v53, %v2047_v50  ;;  %v3189_v56 = vadd.f32 %v2120_v54, %v2119_v52  ;;  %v1195_v37 = vadd.f32 %v2046_v49, %v3202_v17 }
 0x103   :  { %v1198_v43 = vadd.f32 %v2049_v55, %v3202_v17 }
 0x105   :  { %v2050_v57 = vpop.f32.mrb[8].mxu0  ;;  %v2122_v58 = vpop.f32.mrb[8].mxu1 }
 0x106   :  { %v2051_v59 = vpop.f32.mrb[9].mxu0  ;;  %v2123_v60 = vpop.f32.mrb[9].mxu1 }
 0x107   :  { %v2052_v61 = vadd.f32 %v2051_v59, %v2050_v57  ;;  %v2053_v62 = vpop.f32.mrb[10].mxu0  ;;  %v3191_v63 = vadd.f32 %v2123_v60, %v2122_v58  ;;  %v2125_v0 = vpop.f32.mrb[10].mxu1 }
 0x108   :  { %v2054_v1 = vpop.f32.mrb[11].mxu0  ;;  %v2126_v2 = vpop.f32.mrb[11].mxu1 }
 0x109   :  { %v2055_v3 = vadd.f32 %v2054_v1, %v2053_v62  ;;  %v3193_v4 = vadd.f32 %v2126_v2, %v2125_v0  ;;  %v1203_v49 = vadd.f32 %v2052_v61, %v3202_v17 }
 0x10b   :  { %v1206_v55 = vadd.f32 %v2055_v3, %v3202_v17 }
 0x10d   :  { %v2056_v5 = vpop.f32.mrb[12].mxu0  ;;  %v2128_v6 = vpop.f32.mrb[12].mxu1 }
 0x10e   :  { %v2057_v7 = vpop.f32.mrb[13].mxu0  ;;  %v2129_v8 = vpop.f32.mrb[13].mxu1 }
 0x10f   :  { %v2058_v9 = vadd.f32 %v2057_v7, %v2056_v5  ;;  %v2059_v10 = vpop.f32.mrb[14].mxu0  ;;  %v3195_v11 = vadd.f32 %v2129_v8, %v2128_v6  ;;  %v2131_v12 = vpop.f32.mrb[14].mxu1 }
 0x110   :  { %v2060_v13 = vpop.f32.mrb[15].mxu0  ;;  %v2132_v14 = vpop.f32.mrb[15].mxu1 }
 0x111   :  { %v2061_v15 = vadd.f32 %v2060_v13, %v2059_v10  ;;  %v3197_v16 = vadd.f32 %v2132_v14, %v2131_v12  ;;  %v1211_v61 = vadd.f32 %v2058_v9, %v3202_v17 }
 0x113   :  { %v1214_v3 = vadd.f32 %v2061_v15, %v3202_v17 }
 0x115   :  { %v2062_v18 = vpop.f32.mrb[16].mxu0  ;;  %v2150_v19 = vpop.f32.mrb[16].mxu1 }
 0x116   :  { %v2063_v20 = vpop.f32.mrb[17].mxu0  ;;  %v2151_v21 = vpop.f32.mrb[17].mxu1 }
 0x117   :  { %v3205_v23 = vadd.f32 %v2063_v20, %v2062_v18  ;;  %v2152_v24 = vadd.f32 %v2151_v21, %v2150_v19  ;;  %v2065_v25 = vpop.f32.mrb[18].mxu0  ;;  %v2153_v26 = vpop.f32.mrb[18].mxu1 }
 0x118   :  { %v2066_v27 = vpop.f32.mrb[19].mxu0  ;;  %v2154_v28 = vpop.f32.mrb[19].mxu1 }
 0x119   :  { %v3208_v30 = vadd.f32 %v2152_v24, %v1187_v22  ;;  %v2067_v31 = vadd.f32 %v2066_v27, %v2065_v25  ;;  %v2155_v32 = vadd.f32 %v2154_v28, %v2153_v26  ;;  %v1219_v9 = vadd.f32 %v3205_v23, %v3202_v17 }
 0x11b   :  { %v3210_v33 = vadd.f32 %v2155_v32, %v1190_v29 }
 0x11d   :  { %v2068_v34 = vpop.f32.mrb[20].mxu0  ;;  %v2156_v35 = vpop.f32.mrb[20].mxu1 }
 0x11e   :  { %v2069_v36 = vpop.f32.mrb[21].mxu0  ;;  %v2157_v38 = vpop.f32.mrb[21].mxu1 }
 0x11f   :  { %v3213_v40 = vadd.f32 %v2069_v36, %v2068_v34  ;;  %v2158_v41 = vadd.f32 %v2157_v38, %v2156_v35  ;;  %v2071_v42 = vpop.f32.mrb[22].mxu0  ;;  %v2159_v45 = vpop.f32.mrb[22].mxu1 }
 0x120   :  { %v2072_v46 = vpop.f32.mrb[23].mxu0  ;;  %v2160_v47 = vpop.f32.mrb[23].mxu1 }
 0x121   :  { %v3216_v48 = vadd.f32 %v2158_v41, %v1195_v37  ;;  %v2073_v50 = vadd.f32 %v2072_v46, %v2071_v42  ;;  %v2161_v52 = vadd.f32 %v2160_v47, %v2159_v45  ;;  %v1222_v46 = vadd.f32 %v2067_v31, %v3202_v17 }
 0x122   :  { %v1227_v23 = vadd.f32 %v3213_v40, %v3202_v17 }
 0x123   :  { %v3218_v53 = vadd.f32 %v2161_v52, %v1198_v43 }
 0x125   :  { %v2074_v54 = vpop.f32.mrb[24].mxu0  ;;  %v2162_v57 = vpop.f32.mrb[24].mxu1 }
 0x126   :  { %v2075_v58 = vpop.f32.mrb[25].mxu0  ;;  %v2163_v59 = vpop.f32.mrb[25].mxu1 }
 0x127   :  { %v3221_v60 = vadd.f32 %v2075_v58, %v2074_v54  ;;  %v2164_v62 = vadd.f32 %v2163_v59, %v2162_v57  ;;  %v2077_v0 = vpop.f32.mrb[26].mxu0  ;;  %v2165_v1 = vpop.f32.mrb[26].mxu1 }
 0x128   :  { %v2078_v2 = vpop.f32.mrb[27].mxu0  ;;  %v2166_v5 = vpop.f32.mrb[27].mxu1 }
 0x129   :  { %v3224_v6 = vadd.f32 %v2164_v62, %v1203_v49  ;;  %v2079_v7 = vadd.f32 %v2078_v2, %v2077_v0  ;;  %v2167_v8 = vadd.f32 %v2166_v5, %v2165_v1  ;;  %v1235_v40 = vadd.f32 %v3221_v60, %v3202_v17 }
 0x12b   :  { %v3226_v10 = vadd.f32 %v2167_v8, %v1206_v55  ;;  %v1230_v55 = vadd.f32 %v2073_v50, %v3202_v17 }
 0x12d   :  { %v2080_v12 = vpop.f32.mrb[28].mxu0  ;;  %v2168_v13 = vpop.f32.mrb[28].mxu1 }
 0x12e   :  { %v2081_v14 = vpop.f32.mrb[29].mxu0  ;;  %v2169_v18 = vpop.f32.mrb[29].mxu1 }
 0x12f   :  { %v3229_v19 = vadd.f32 %v2081_v14, %v2080_v12  ;;  %v2170_v20 = vadd.f32 %v2169_v18, %v2168_v13  ;;  %v2083_v21 = vpop.f32.mrb[30].mxu0  ;;  %v2171_v22 = vpop.f32.mrb[30].mxu1 }
 0x130   :  { %v2084_v24 = vpop.f32.mrb[31].mxu0  ;;  %v2172_v25 = vpop.f32.mrb[31].mxu1 }
 0x131   :  { %v3232_v26 = vadd.f32 %v2170_v20, %v1211_v61  ;;  %v2085_v27 = vadd.f32 %v2084_v24, %v2083_v21  ;;  %v2173_v28 = vadd.f32 %v2172_v25, %v2171_v22 }
 0x133   :  { %v3234_v29 = vadd.f32 %v2173_v28, %v1214_v3 }
 0x135   :  { %v2086_v32 = vpop.f32.mrb[32].mxu0  ;;  %v2174_v34 = vpop.f32.mrb[32].mxu1 }
 0x136   :  { %v2087_v35 = vpop.f32.mrb[33].mxu0  ;;  %v2175_v36 = vpop.f32.mrb[33].mxu1 }
 0x137   :  { %v3238_v38 = vadd.f32 %v2087_v35, %v2086_v32  ;;  %v2176_v37 = vadd.f32 %v2175_v36, %v2174_v34  ;;  %v2089_v41 = vpop.f32.mrb[34].mxu0  ;;  %v2177_v42 = vpop.f32.mrb[34].mxu1  ;;  %v1238_v32 = vadd.f32 %v2079_v7, %v3202_v17 }
 0x138   :  { %v2090_v45 = vpop.f32.mrb[35].mxu0  ;;  %v2178_v15 = vpop.f32.mrb[35].mxu1 }
 0x139   :  { %v3241_v47 = vadd.f32 %v2176_v37, %v1219_v9  ;;  %v2091_v43 = vadd.f32 %v2090_v45, %v2089_v41  ;;  %v2179_v52 = vadd.f32 %v2178_v15, %v2177_v42  ;;  %v1243_v45 = vadd.f32 %v3229_v19, %v3202_v17 }
 0x13b   :  { %v3243_v54 = vadd.f32 %v2179_v52, %v1222_v46 }
 0x13d   :  { %v2092_v57 = vpop.f32.mrb[36].mxu0  ;;  %v2180_v58 = vpop.f32.mrb[36].mxu1 }
 0x13e   :  { %v2093_v59 = vpop.f32.mrb[37].mxu0  ;;  %v2181_v49 = vpop.f32.mrb[37].mxu1 }
 0x13f   :  { %v3247_v62 = vadd.f32 %v2093_v59, %v2092_v57  ;;  %v2182_v0 = vadd.f32 %v2181_v49, %v2180_v58  ;;  %v2095_v1 = vpop.f32.mrb[38].mxu0  ;;  %v2183_v2 = vpop.f32.mrb[38].mxu1  ;;  %v1246_v59 = vadd.f32 %v2085_v27, %v3202_v17  ;;  %v1254_v27 = vadd.f32 %v2091_v43, %v3202_v17 }
 0x140   :  { %v2096_v5 = vpop.f32.mrb[39].mxu0  ;;  %v2184_v31 = vpop.f32.mrb[39].mxu1 }
 0x141   :  { %v3250_v8 = vadd.f32 %v2182_v0, %v1227_v23  ;;  %v2097_v12 = vadd.f32 %v2096_v5, %v2095_v1  ;;  %v2185_v13 = vadd.f32 %v2184_v31, %v2183_v2  ;;  %v1259_v43 = vadd.f32 %v3247_v62, %v3202_v17 }
 0x143   :  { %v3252_v14 = vadd.f32 %v2185_v13, %v1230_v55  ;;  %v1251_v55 = vadd.f32 %v3238_v38, %v3202_v17 }
 0x145   :  { %v2098_v18 = vpop.f32.mrb[40].mxu0  ;;  %v2186_v61 = vpop.f32.mrb[40].mxu1 }
 0x146   :  { %v2099_v20 = vpop.f32.mrb[41].mxu0  ;;  %v2187_v21 = vpop.f32.mrb[41].mxu1 }
 0x147   :  { %v3256_v22 = vadd.f32 %v2099_v20, %v2098_v18  ;;  %v2188_v24 = vadd.f32 %v2187_v21, %v2186_v61  ;;  %v2101_v25 = vpop.f32.mrb[42].mxu0  ;;  %v2189_v3 = vpop.f32.mrb[42].mxu1 }
 0x148   :  { %v2102_v28 = vpop.f32.mrb[43].mxu0  ;;  %v2190_v50 = vpop.f32.mrb[43].mxu1 }
 0x149   :  { %v3259_v34 = vadd.f32 %v2188_v24, %v1235_v40  ;;  %v3261_v35 = vadd.f32 %v2102_v28, %v2101_v25  ;;  %v2191_v36 = vadd.f32 %v2190_v50, %v2189_v3 }
 0x14b   :  { %v3263_v9 = vadd.f32 %v2191_v36, %v1238_v32 }
 0x14d   :  { %v2104_v37 = vpop.f32.mrb[44].mxu0  ;;  %v2192_v41 = vpop.f32.mrb[44].mxu1 }
 0x14e   :  { %v2105_v42 = vpop.f32.mrb[45].mxu0  ;;  %v2193_v60 = vpop.f32.mrb[45].mxu1 }
 0x14f   :  { %v3267_v15 = vadd.f32 %v2105_v42, %v2104_v37  ;;  %v2194_v46 = vadd.f32 %v2193_v60, %v2192_v41  ;;  %v2107_v52 = vpop.f32.mrb[46].mxu0  ;;  %v2195_v57 = vpop.f32.mrb[46].mxu1 }
 0x150   :  { %v2108_v7 = vpop.f32.mrb[47].mxu0  ;;  %v2196_v58 = vpop.f32.mrb[47].mxu1 }
 0x151   :  { %v3270_v49 = vadd.f32 %v2194_v46, %v1243_v45  ;;  %v3272_v23 = vadd.f32 %v2108_v7, %v2107_v52  ;;  %v2197_v0 = vadd.f32 %v2196_v58, %v2195_v57  ;;  %v1262_v52 = vadd.f32 %v2097_v12, %v3202_v17 }
 0x152   :  { %v1267_v12 = vadd.f32 %v3256_v22, %v3202_v17 }
 0x153   :  { %v3274_v1 = vadd.f32 %v2197_v0, %v1246_v59 }
 0x155   :  { %v2198_v2 = vpop.f32.mrb[48].mxu1  ;;  %v2262_v5 = vpop.f32.mrb[48].mxu0 }
 0x156   :  { %v2199_v31 = vpop.f32.mrb[49].mxu1  ;;  %v2263_v19 = vpop.f32.mrb[49].mxu0 }
 0x157   :  { %v2200_v13 = vadd.f32 %v2199_v31, %v2198_v2  ;;  %v2264_v18 = vadd.f32 %v2263_v19, %v2262_v5  ;;  %v2201_v61 = vpop.f32.mrb[50].mxu1  ;;  %v2265_v20 = vpop.f32.mrb[50].mxu0 }
 0x158   :  { %v2202_v21 = vpop.f32.mrb[51].mxu1  ;;  %v2266_v40 = vpop.f32.mrb[51].mxu0 }
 0x159   :  { %v3279_v24 = vadd.f32 %v2200_v13, %v1251_v55  ;;  %v2203_v25 = vadd.f32 %v2202_v21, %v2201_v61  ;;  %v2267_v3 = vadd.f32 %v2266_v40, %v2265_v20  ;;  %v3282_v28 = vadd.f32 %v2264_v18, %v3208_v30 }
 0x15b   :  { %v3284_v50 = vadd.f32 %v2203_v25, %v1254_v27  ;;  %v3287_v32 = vadd.f32 %v2267_v3, %v3210_v33 }
 0x15d   :  { %v2204_v38 = vpop.f32.mrb[52].mxu1  ;;  %v2268_v36 = vpop.f32.mrb[52].mxu0 }
 0x15e   :  { %v2205_v37 = vpop.f32.mrb[53].mxu1  ;;  %v2269_v41 = vpop.f32.mrb[53].mxu0 }
 0x15f   :  { %v2206_v42 = vadd.f32 %v2205_v37, %v2204_v38  ;;  %v2270_v60 = vadd.f32 %v2269_v41, %v2268_v36  ;;  %v2207_v45 = vpop.f32.mrb[54].mxu1  ;;  %v2271_v46 = vpop.f32.mrb[54].mxu0 }
 0x160   :  { %v2208_v30 = vpop.f32.mrb[55].mxu1  ;;  %v2272_v57 = vpop.f32.mrb[55].mxu0 }
 0x161   :  { %v3292_v7 = vadd.f32 %v2206_v42, %v1259_v43  ;;  %v2209_v58 = vadd.f32 %v2208_v30, %v2207_v45  ;;  %v2273_v33 = vadd.f32 %v2272_v57, %v2271_v46  ;;  %v3295_v59 = vadd.f32 %v2270_v60, %v3216_v48 }
 0x162   :  { %v1270_v48 = vadd.f32 %v3261_v35, %v3202_v17  ;;  %v1275_v35 = vadd.f32 %v3267_v15, %v3202_v17 }
 0x163   :  { %v3297_v0 = vadd.f32 %v2209_v58, %v1262_v52  ;;  %v3300_v2 = vadd.f32 %v2273_v33, %v3218_v53 }
 0x165   :  { %v2210_v62 = vpop.f32.mrb[56].mxu1  ;;  %v2274_v5 = vpop.f32.mrb[56].mxu0 }
 0x166   :  { %v2211_v31 = vpop.f32.mrb[57].mxu1  ;;  %v2275_v19 = vpop.f32.mrb[57].mxu0 }
 0x167   :  { %v2212_v55 = vadd.f32 %v2211_v31, %v2210_v62  ;;  %v2276_v13 = vadd.f32 %v2275_v19, %v2274_v5  ;;  %v2213_v18 = vpop.f32.mrb[58].mxu1  ;;  %v2277_v61 = vpop.f32.mrb[58].mxu0 }
 0x168   :  { %v2214_v20 = vpop.f32.mrb[59].mxu1  ;;  %v2278_v27 = vpop.f32.mrb[59].mxu0 }
 0x169   :  { %v3306_v21 = vadd.f32 %v2212_v55, %v1267_v12  ;;  %v2215_v53 = vadd.f32 %v2214_v20, %v2213_v18  ;;  %v2279_v40 = vadd.f32 %v2278_v27, %v2277_v61  ;;  %v3309_v25 = vadd.f32 %v2276_v13, %v3224_v6 }
 0x16a   :  { %v1278_v6 = vadd.f32 %v3272_v23, %v3202_v17  ;;  %v1283_v23 = vadd.f32 %v3182_v39, %v3202_v17 }
 0x16b   :  { %v3311_v3 = vadd.f32 %v2215_v53, %v1270_v48  ;;  %v3314_v22 = vadd.f32 %v2279_v40, %v3226_v10 }
 0x16d   :  { %v2216_v38 = vpop.f32.mrb[60].mxu1  ;;  %v2280_v36 = vpop.f32.mrb[60].mxu0 }
 0x16e   :  { %v2217_v37 = vpop.f32.mrb[61].mxu1  ;;  %v2281_v41 = vpop.f32.mrb[61].mxu0 }
 0x16f   :  { %v2218_v43 = vadd.f32 %v2217_v37, %v2216_v38  ;;  %v2282_v42 = vadd.f32 %v2281_v41, %v2280_v36  ;;  %v2219_v60 = vpop.f32.mrb[62].mxu1  ;;  %v2283_v45 = vpop.f32.mrb[62].mxu0 }
 0x170   :  { %v2220_v46 = vpop.f32.mrb[63].mxu1  ;;  %v2284_v52 = vpop.f32.mrb[63].mxu0 }
 0x171   :  { %v3320_v30 = vadd.f32 %v2218_v43, %v1275_v35  ;;  %v2221_v10 = vadd.f32 %v2220_v46, %v2219_v60  ;;  %v2285_v57 = vadd.f32 %v2284_v52, %v2283_v45  ;;  %v3323_v58 = vadd.f32 %v2282_v42, %v3232_v26 }
 0x172   :  { %v1286_v26 = vadd.f32 %v3184_v44, %v3202_v17  ;;  %v1291_v44 = vadd.f32 %v3187_v51, %v3202_v17 }
 0x173   :  { %v3325_v33 = vadd.f32 %v2221_v10, %v1278_v6  ;;  %v3328_v15 = vadd.f32 %v2285_v57, %v3234_v29 }
 0x175   :  { %v2222_v62 = vpop.f32.mrb[64].mxu1  ;;  %v2286_v5 = vpop.f32.mrb[64].mxu0 }
 0x176   :  { %v2223_v31 = vpop.f32.mrb[65].mxu1  ;;  %v2287_v19 = vpop.f32.mrb[65].mxu0 }
 0x177   :  { %v2224_v12 = vadd.f32 %v2223_v31, %v2222_v62  ;;  %v2288_v55 = vadd.f32 %v2287_v19, %v2286_v5  ;;  %v2225_v13 = vpop.f32.mrb[66].mxu1  ;;  %v2289_v18 = vpop.f32.mrb[66].mxu0 }
 0x178   :  { %v2226_v61 = vpop.f32.mrb[67].mxu1  ;;  %v2290_v48 = vpop.f32.mrb[67].mxu0 }
 0x179   :  { %v3334_v20 = vadd.f32 %v2224_v12, %v1283_v23  ;;  %v2227_v29 = vadd.f32 %v2226_v61, %v2225_v13  ;;  %v2291_v27 = vadd.f32 %v2290_v48, %v2289_v18  ;;  %v3337_v53 = vadd.f32 %v2288_v55, %v3241_v47 }
 0x17a   :  { %v1294_v47 = vadd.f32 %v3189_v56, %v3202_v17  ;;  %v1299_v56 = vadd.f32 %v3191_v63, %v3202_v17 }
 0x17b   :  { %v3339_v40 = vadd.f32 %v2227_v29, %v1286_v26  ;;  %v3342_v39 = vadd.f32 %v2291_v27, %v3243_v54 }
 0x17d   :  { %v2228_v38 = vpop.f32.mrb[68].mxu1  ;;  %v2292_v36 = vpop.f32.mrb[68].mxu0 }
 0x17e   :  { %v2229_v37 = vpop.f32.mrb[69].mxu1  ;;  %v2293_v41 = vpop.f32.mrb[69].mxu0 }
 0x17f   :  { %v2230_v35 = vadd.f32 %v2229_v37, %v2228_v38  ;;  %v2294_v43 = vadd.f32 %v2293_v41, %v2292_v36  ;;  %v2231_v42 = vpop.f32.mrb[70].mxu1  ;;  %v2295_v60 = vpop.f32.mrb[70].mxu0 }
 0x180   :  { %v2232_v45 = vpop.f32.mrb[71].mxu1  ;;  %v2296_v6 = vpop.f32.mrb[71].mxu0 }
 0x181   :  { %v3348_v46 = vadd.f32 %v2230_v35, %v1291_v44  ;;  %v2233_v54 = vadd.f32 %v2232_v45, %v2231_v42  ;;  %v2297_v52 = vadd.f32 %v2296_v6, %v2295_v60  ;;  %v3351_v10 = vadd.f32 %v2294_v43, %v3250_v8 }
 0x182   :  { %v1302_v8 = vadd.f32 %v3193_v4, %v3202_v17  ;;  %v1307_v4 = vadd.f32 %v3195_v11, %v3202_v17 }
 0x183   :  { %v3353_v57 = vadd.f32 %v2233_v54, %v1294_v47  ;;  %v3356_v51 = vadd.f32 %v2297_v52, %v3252_v14 }
 0x185   :  { %v2234_v62 = vpop.f32.mrb[72].mxu1  ;;  %v2298_v5 = vpop.f32.mrb[72].mxu0 }
 0x186   :  { %v2235_v31 = vpop.f32.mrb[73].mxu1  ;;  %v2299_v19 = vpop.f32.mrb[73].mxu0 }
 0x187   :  { %v2236_v23 = vadd.f32 %v2235_v31, %v2234_v62  ;;  %v2300_v12 = vadd.f32 %v2299_v19, %v2298_v5  ;;  %v2237_v55 = vpop.f32.mrb[74].mxu1  ;;  %v2301_v13 = vpop.f32.mrb[74].mxu0 }
 0x188   :  { %v2238_v18 = vpop.f32.mrb[75].mxu1  ;;  %v2302_v26 = vpop.f32.mrb[75].mxu0 }
 0x189   :  { %v3362_v61 = vadd.f32 %v2236_v23, %v1299_v56  ;;  %v2239_v14 = vadd.f32 %v2238_v18, %v2237_v55  ;;  %v2303_v48 = vadd.f32 %v2302_v26, %v2301_v13  ;;  %v3365_v29 = vadd.f32 %v2300_v12, %v3259_v34 }
 0x18a   :  { %v1310_v34 = vadd.f32 %v3197_v16, %v3202_v17 }
 0x18b   :  { %v3367_v27 = vadd.f32 %v2239_v14, %v1302_v8  ;;  %v3370_v63 = vadd.f32 %v2303_v48, %v3263_v9 }
 0x18d   :  { %v2240_v38 = vpop.f32.mrb[76].mxu1  ;;  %v2304_v36 = vpop.f32.mrb[76].mxu0 }
 0x18e   :  { %v2241_v37 = vpop.f32.mrb[77].mxu1  ;;  %v2305_v41 = vpop.f32.mrb[77].mxu0 }
 0x18f   :  { %v2242_v44 = vadd.f32 %v2241_v37, %v2240_v38  ;;  %v2306_v35 = vadd.f32 %v2305_v41, %v2304_v36  ;;  %v2243_v43 = vpop.f32.mrb[78].mxu1  ;;  %v2307_v42 = vpop.f32.mrb[78].mxu0 }
 0x190   :  { %v2244_v60 = vpop.f32.mrb[79].mxu1  ;;  %v2308_v47 = vpop.f32.mrb[79].mxu0 }
 0x191   :  { %v3376_v45 = vadd.f32 %v2242_v44, %v1307_v4  ;;  %v2245_v9 = vadd.f32 %v2244_v60, %v2243_v43  ;;  %v2309_v6 = vadd.f32 %v2308_v47, %v2307_v42  ;;  %v3379_v54 = vadd.f32 %v2306_v35, %v3270_v49 }
 0x193   :  { %v3381_v52 = vadd.f32 %v2245_v9, %v1310_v34  ;;  %v3384_v11 = vadd.f32 %v2309_v6, %v3274_v1 }
 0x195   :  { %v2310_v62 = vpop.f32.mrb[80].mxu0  ;;  %v2379_v5 = vpop.f32.mrb[80].mxu1 }
 0x196   :  { %v1678_v31 = vadd.f32 %v2379_v5, %v3295_v59  ;;  %v2311_v19 = vpop.f32.mrb[81].mxu0  ;;  %v1669_v16 = vpop.f32.mrb[81].mxu1 }
 0x197   :  { %v2312_v17 = vadd.f32 %v2311_v19, %v2310_v62  ;;  %v1670_v56 = vadd.f32 %v1669_v16, %v3282_v28  ;;  %v2313_v23 = vpop.f32.mrb[82].mxu0  ;;  %v2380_v12 = vpop.f32.mrb[82].mxu1 }
 0x198   :  { %1798 = vst [vmem:[#allocation2 + $0x10] sm:$0xff] %v1678_v31  ;;  %v1681_v49 = vadd.f32 %v2380_v12, %v3300_v2  ;;  %v2314_v55 = vpop.f32.mrb[83].mxu0  ;;  %v1672_v13 = vpop.f32.mrb[83].mxu1 }
 0x199   :  { %1796 = vst [vmem:[#allocation2] sm:$0xff] %v1670_v56  ;;  %v2315_v8 = vadd.f32 %v2314_v55, %v2313_v23  ;;  %v1673_v1 = vadd.f32 %v1672_v13, %v3287_v32  ;;  %v3391_v18 = vadd.f32 %v2312_v17, %v3279_v24 }
 0x19a   :  { %1799 = vst [vmem:[#allocation2 + $0x18] sm:$0xff] %v1681_v49 }
 0x19b   :  { %1797 = vst [vmem:[#allocation2 + $0x8] sm:$0xff] %v1673_v1  ;;  %v3394_v59 = vadd.f32 %v2315_v8, %v3284_v50 }
 0x19d   :  { %v2316_v28 = vpop.f32.mrb[84].mxu0  ;;  %v2383_v26 = vpop.f32.mrb[84].mxu1 }
 0x19e   :  { %v1694_v14 = vadd.f32 %v2383_v26, %v3323_v58  ;;  %v2317_v48 = vpop.f32.mrb[85].mxu0  ;;  %v1685_v2 = vpop.f32.mrb[85].mxu1 }
 0x19f   :  { %v2318_v38 = vadd.f32 %v2317_v48, %v2316_v28  ;;  %v1686_v36 = vadd.f32 %v1685_v2, %v3309_v25  ;;  %v2319_v37 = vpop.f32.mrb[86].mxu0  ;;  %v2384_v41 = vpop.f32.mrb[86].mxu1 }
 0x1a0   :  { %1802 = vst [vmem:[#allocation2 + $0x30] sm:$0xff] %v1694_v14  ;;  %v1697_v24 = vadd.f32 %v2384_v41, %v3328_v15  ;;  %v2320_v32 = vpop.f32.mrb[87].mxu0  ;;  %v1688_v4 = vpop.f32.mrb[87].mxu1 }
 0x1a1   :  { %1800 = vst [vmem:[#allocation2 + $0x20] sm:$0xff] %v1686_v36  ;;  %v2321_v44 = vadd.f32 %v2320_v32, %v2319_v37  ;;  %v1689_v50 = vadd.f32 %v1688_v4, %v3314_v22  ;;  %v1581_v35 = vadd.f32 %v2318_v38, %v3292_v7 }
 0x1a2   :  { %1803 = vst [vmem:[#allocation2 + $0x38] sm:$0xff] %v1697_v24 }
 0x1a3   :  { %1801 = vst [vmem:[#allocation2 + $0x28] sm:$0xff] %v1689_v50  ;;  %v1584_v58 = vadd.f32 %v2321_v44, %v3297_v0 }
 0x1a5   :  { %v2322_v43 = vpop.f32.mrb[88].mxu0  ;;  %v2387_v42 = vpop.f32.mrb[88].mxu1 }
 0x1a6   :  { %v1710_v25 = vadd.f32 %v2387_v42, %v3351_v10  ;;  %v2323_v34 = vpop.f32.mrb[89].mxu0  ;;  %v1701_v60 = vpop.f32.mrb[89].mxu1 }
 0x1a7   :  { %v2324_v47 = vadd.f32 %v2323_v34, %v2322_v43  ;;  %v1702_v15 = vadd.f32 %v1701_v60, %v3337_v53  ;;  %v2325_v9 = vpop.f32.mrb[90].mxu0  ;;  %v2388_v6 = vpop.f32.mrb[90].mxu1 }
 0x1a8   :  { %1806 = vst [vmem:[#allocation2 + $0x50] sm:$0xff] %v1710_v25  ;;  %v1713_v22 = vadd.f32 %v2388_v6, %v3356_v51  ;;  %v2326_v62 = vpop.f32.mrb[91].mxu0  ;;  %v1704_v7 = vpop.f32.mrb[91].mxu1 }
 0x1a9   :  { %1804 = vst [vmem:[#allocation2 + $0x40] sm:$0xff] %v1702_v15  ;;  %v2327_v5 = vadd.f32 %v2326_v62, %v2325_v9  ;;  %v1705_v0 = vadd.f32 %v1704_v7, %v3342_v39  ;;  %v1589_v31 = vadd.f32 %v2324_v47, %v3306_v21 }
 0x1aa   :  { %1807 = vst [vmem:[#allocation2 + $0x58] sm:$0xff] %v1713_v22 }
 0x1ab   :  { %1805 = vst [vmem:[#allocation2 + $0x48] sm:$0xff] %v1705_v0  ;;  %v1592_v10 = vadd.f32 %v2327_v5, %v3311_v3 }
 0x1ad   :  { %v2328_v19 = vpop.f32.mrb[92].mxu0  ;;  %v2391_v16 = vpop.f32.mrb[92].mxu1 }
 0x1ae   :  { %v1726_v53 = vadd.f32 %v2391_v16, %v3379_v54  ;;  %v2329_v17 = vpop.f32.mrb[93].mxu0  ;;  %v1717_v56 = vpop.f32.mrb[93].mxu1 }
 0x1af   :  { %v2330_v23 = vadd.f32 %v2329_v17, %v2328_v19  ;;  %v1718_v51 = vadd.f32 %v1717_v56, %v3365_v29  ;;  %v2331_v12 = vpop.f32.mrb[94].mxu0  ;;  %v2392_v49 = vpop.f32.mrb[94].mxu1 }
 0x1b0   :  { %1810 = vst [vmem:[#allocation2 + $0x70] sm:$0xff] %v1726_v53  ;;  %v1729_v39 = vadd.f32 %v2392_v49, %v3384_v11  ;;  %v2332_v55 = vpop.f32.mrb[95].mxu0  ;;  %v1720_v21 = vpop.f32.mrb[95].mxu1 }
 0x1b1   :  { %1808 = vst [vmem:[#allocation2 + $0x60] sm:$0xff] %v1718_v51  ;;  %v2333_v13 = vadd.f32 %v2332_v55, %v2331_v12  ;;  %v1721_v3 = vadd.f32 %v1720_v21, %v3370_v63  ;;  %v1597_v8 = vadd.f32 %v2330_v23, %v3320_v30 }
 0x1b2   :  { %1811 = vst [vmem:[#allocation2 + $0x78] sm:$0xff] %v1729_v39 }
 0x1b3   :  { %1809 = vst [vmem:[#allocation2 + $0x68] sm:$0xff] %v1721_v3  ;;  %v1600_v54 = vadd.f32 %v2333_v13, %v3325_v33 }
 0x1b5   :  { %v2334_v1 = vpop.f32.mrb[96].mxu0  ;;  %v2395_v28 = vpop.f32.mrb[96].mxu1 }
 0x1b6   :  { %v1742_v29 = vadd.f32 %v2395_v28, %v1581_v35  ;;  %v2335_v26 = vpop.f32.mrb[97].mxu0  ;;  %v1733_v14 = vpop.f32.mrb[97].mxu1 }
 0x1b7   :  { %v2336_v48 = vadd.f32 %v2335_v26, %v2334_v1  ;;  %v1734_v11 = vadd.f32 %v1733_v14, %v3391_v18  ;;  %v2337_v2 = vpop.f32.mrb[98].mxu0  ;;  %v2396_v38 = vpop.f32.mrb[98].mxu1 }
 0x1b8   :  { %1814 = vst [vmem:[#allocation2 + $0x90] sm:$0xff] %v1742_v29  ;;  %v1745_v36 = vadd.f32 %v2396_v38, %v1584_v58  ;;  %v2338_v37 = vpop.f32.mrb[99].mxu0  ;;  %v1736_v63 = vpop.f32.mrb[99].mxu1 }
 0x1b9   :  { %1812 = vst [vmem:[#allocation2 + $0x80] sm:$0xff] %v1734_v11  ;;  %v2339_v30 = vadd.f32 %v2338_v37, %v2337_v2  ;;  %v1737_v41 = vadd.f32 %v1736_v63, %v3394_v59  ;;  %v1605_v33 = vadd.f32 %v2336_v48, %v3334_v20 }
 0x1ba   :  { %1815 = vst [vmem:[#allocation2 + $0x98] sm:$0xff] %v1745_v36 }
 0x1bb   :  { %1813 = vst [vmem:[#allocation2 + $0x88] sm:$0xff] %v1737_v41  ;;  %v1608_v24 = vadd.f32 %v2339_v30, %v3339_v40 }
 0x1bd   :  { %v2340_v32 = vpop.f32.mrb[100].mxu0  ;;  %v2399_v4 = vpop.f32.mrb[100].mxu1 }
 0x1be   :  { %v1758_v44 = vadd.f32 %v2399_v4, %v1597_v8  ;;  %v2341_v18 = vpop.f32.mrb[101].mxu0  ;;  %v1749_v50 = vpop.f32.mrb[101].mxu1 }
 0x1bf   :  { %v2342_v35 = vadd.f32 %v2341_v18, %v2340_v32  ;;  %v1750_v43 = vadd.f32 %v1749_v50, %v1589_v31  ;;  %v2343_v58 = vpop.f32.mrb[102].mxu0  ;;  %v2400_v42 = vpop.f32.mrb[102].mxu1 }
 0x1c0   :  { %1818 = vst [vmem:[#allocation2 + $0xb0] sm:$0xff] %v1758_v44  ;;  %v1761_v25 = vadd.f32 %v2400_v42, %v1600_v54  ;;  %v2344_v34 = vpop.f32.mrb[103].mxu0  ;;  %v1752_v60 = vpop.f32.mrb[103].mxu1 }
 0x1c1   :  { %1816 = vst [vmem:[#allocation2 + $0xa0] sm:$0xff] %v1750_v43  ;;  %v2345_v59 = vadd.f32 %v2344_v34, %v2343_v58  ;;  %v1753_v20 = vadd.f32 %v1752_v60, %v1592_v10  ;;  %v1613_v47 = vadd.f32 %v2342_v35, %v3348_v46 }
 0x1c2   :  { %1819 = vst [vmem:[#allocation2 + $0xb8] sm:$0xff] %v1761_v25 }
 0x1c3   :  { %1817 = vst [vmem:[#allocation2 + $0xa8] sm:$0xff] %v1753_v20  ;;  %v1616_v40 = vadd.f32 %v2345_v59, %v3353_v57 }
 0x1c5   :  { %v2346_v15 = vpop.f32.mrb[104].mxu0  ;;  %v2403_v9 = vpop.f32.mrb[104].mxu1 }
 0x1c6   :  { %v1774_v6 = vadd.f32 %v2403_v9, %v1613_v47  ;;  %v2347_v22 = vpop.f32.mrb[105].mxu0  ;;  %v1765_v62 = vpop.f32.mrb[105].mxu1 }
 0x1c7   :  { %v2348_v7 = vadd.f32 %v2347_v22, %v2346_v15  ;;  %v1766_v5 = vadd.f32 %v1765_v62, %v1605_v33  ;;  %v2349_v0 = vpop.f32.mrb[106].mxu0  ;;  %v2404_v31 = vpop.f32.mrb[106].mxu1 }
 0x1c8   :  { %1822 = vst [vmem:[#allocation2 + $0xd0] sm:$0xff] %v1774_v6  ;;  %v1777_v19 = vadd.f32 %v2404_v31, %v1616_v40  ;;  %v2350_v16 = vpop.f32.mrb[107].mxu0  ;;  %v1768_v53 = vpop.f32.mrb[107].mxu1 }
 0x1c9   :  { %1820 = vst [vmem:[#allocation2 + $0xc0] sm:$0xff] %v1766_v5  ;;  %v2351_v10 = vadd.f32 %v2350_v16, %v2349_v0  ;;  %v1769_v46 = vadd.f32 %v1768_v53, %v1608_v24  ;;  %v1621_v17 = vadd.f32 %v2348_v7, %v3362_v61 }
 0x1ca   :  { %1823 = vst [vmem:[#allocation2 + $0xd8] sm:$0xff] %v1777_v19 }
 0x1cb   :  { %1821 = vst [vmem:[#allocation2 + $0xc8] sm:$0xff] %v1769_v46  ;;  %v1624_v57 = vadd.f32 %v2351_v10, %v3367_v27 }
 0x1cd   :  { %v2352_v56 = vpop.f32.mrb[108].mxu0  ;;  %v2407_v23 = vpop.f32.mrb[108].mxu1 }
 0x1ce   :  { %v2353_v51 = vpop.f32.mrb[109].mxu0  ;;  %v1781_v12 = vpop.f32.mrb[109].mxu1 }
 0x1cf   :  { %v2354_v49 = vadd.f32 %v2353_v51, %v2352_v56  ;;  %v1782_v39 = vadd.f32 %v1781_v12, %v1621_v17  ;;  %v2355_v55 = vpop.f32.mrb[110].mxu0  ;;  %v2408_v21 = vpop.f32.mrb[110].mxu1 }
 0x1d0   :  { %v2356_v13 = vpop.f32.mrb[111].mxu0  ;;  %v1784_v3 = vpop.f32.mrb[111].mxu1 }
 0x1d1   :  { %v1629_v8 = vadd.f32 %v2354_v49, %v3376_v45  ;;  %1824 = vst [vmem:[#allocation2 + $0xe0] sm:$0xff] %v1782_v39  ;;  %v2357_v54 = vadd.f32 %v2356_v13, %v2355_v55  ;;  %v1785_v1 = vadd.f32 %v1784_v3, %v1624_v57 }
 0x1d3   :  { %v1790_v61 = vadd.f32 %v2407_v23, %v1629_v8  ;;  %v1632_v27 = vadd.f32 %v2357_v54, %v3381_v52  ;;  %1825 = vst [vmem:[#allocation2 + $0xe8] sm:$0xff] %v1785_v1 }
 0x1d5   :  { %1826 = vst [vmem:[#allocation2 + $0xf0] sm:$0xff] %v1790_v61  ;;  %v1793_v28 = vadd.f32 %v2408_v21, %v1632_v27 }
 0x1d7   :  { %1827 = vst [vmem:[#allocation2 + $0xf8] sm:$0xff] %v1793_v28 }
 0x1d8   :  { %2648 = shalt.err (!%p2645_p4)
}
 0x1d9   :  { %s2649_s9 = scalar_lea.hbm %s3439_s3, 4096 }
 0x1da   :  { %p2650_p5 = scmp.ne.s32.totalorder %s3439_s3, %s2649_s9  ;;  %p2653_p6 = scmp.lt.u32.totalorder %s2649_s9, %s3439_s3 }
 0x1dc   :  { %p2655_p7 = pnand %p2653_p6, %p2650_p5 }
 0x1de   :  { %2658 = shalt.err (!%p2655_p7)
}
 0x1df   :  { %s2662_s13 = smov 128   ;;  %s2663_s14 = smov 8  }
 0x1e0   :  { %1839 = dma.vmem_to_hbm [thread:$0]  %s1834_s5, 4096, %s3439_s3, [#allocation3], %s2662_s13, %s2662_s13, %s2663_s14  }
 0x1e1   :  { %2659 = dma.done.wait [#allocation3], 4096  }
 0x1e2   :  { %2660 = vsyncadd [#allocation3], 4294963200 }
 0x1e3   :  { %1843 = vsyncpa [#allocation3], 1 }

</bundles_post_ra>
